<compile_context>
chip_gen: v5e
topology: v5e:2x2
jax: 0.10.0
libtpu: 0.0.40
codegen_flags: <defaults>
</compile_context>

<pallas_src>
import functools

import jax
import jax.numpy as jnp
from jax.experimental import pallas as pl
from jax.experimental.pallas import tpu as pltpu

_LANE = 512                    # lane-dense last dim (multiple of 128)
_TILE_ROWS = 2048              # streaming-path row tile -> 4 MiB f32 blocks
_FUSED_MAX_ROWS = 4096         # <= 8 MiB handled by the single-pass fused kernel
_VMEM_CAP = 48 * 1024 * 1024   # stay well under v7x's 64 MiB physical VMEM


def _vmem_limit(buffered_bytes):
    return int(min(buffered_bytes + (4 << 20), _VMEM_CAP))


def _qbounds(num_bits, signed):
    qmin = -(2.0 ** (num_bits - 1)) if signed else 0.0
    qmax = qmin + 2.0 ** num_bits - 1.0
    return qmin, qmax


def _qparams_vector(zero_point, range_, qmin, qmax):
    """[shift, inv_scale, scale] with shift = qmin*scale - zero_point."""
    scale = jnp.maximum(range_ / (qmax - qmin), jnp.float32(1e-8))
    inv_scale = 1.0 / scale
    shift = qmin * scale - zero_point
    return jnp.stack([shift, inv_scale, scale]).astype(jnp.float32)


def _as_slab(x, tile_rows, fused_max_rows):
    """Flatten x to a lane-dense (rows, _LANE) f32 slab, edge-padded.

    Edge padding replicates an existing element, so global min/max over the
    padded slab equals min/max over x; padded outputs are sliced off later.
    """
    flat = x.reshape(-1).astype(jnp.float32)
    n = flat.shape[0]
    rows = pl.cdiv(n, _LANE)
    if rows <= fused_max_rows:
        rows_p = rows                                   # single full block
    else:
        rows_p = pl.cdiv(rows, tile_rows) * tile_rows   # exact tiling
    padded = rows_p * _LANE
    if padded != n:
        flat = jnp.pad(flat, (0, padded - n), mode="edge")
    return flat.reshape(rows_p, _LANE), n


# ---------------------------------------------------------------------------
# Fused single-pass kernel: min/max + quantize with ONE HBM read of x.
# ---------------------------------------------------------------------------
def _fused_kernel(x_ref, o_ref, min_ref, max_ref, *, qmin, qmax, dequantize):
    x = x_ref[...]
    xmin = jnp.min(x)
    xmax = jnp.max(x)
    scale = jnp.maximum((xmax - xmin) / (qmax - qmin), jnp.float32(1e-8))
    inv_scale = 1.0 / scale                 # one scalar reciprocal per call
    shift = qmin * scale - xmin             # zero_point == xmin
    q = jnp.round(jnp.clip((x + shift) * inv_scale, qmin, qmax))
    if dequantize:
        q = q * scale - shift               # == q*scale + (zp - qmin*scale)
    o_ref[...] = q.astype(o_ref.dtype)
    min_ref[...] = xmin.reshape(1, 1)
    max_ref[...] = xmax.reshape(1, 1)


def _fused_quantize(slab, qmin, qmax, dequantize):
    rows, lane = slab.shape
    kernel = functools.partial(_fused_kernel, qmin=qmin, qmax=qmax,
                               dequantize=dequantize)
    block_bytes = rows * lane * 4
    q, xmin, xmax = pl.pallas_call(
        kernel,
        out_shape=(jax.ShapeDtypeStruct((rows, lane), jnp.float32),
                   jax.ShapeDtypeStruct((1, 1), jnp.float32),
                   jax.ShapeDtypeStruct((1, 1), jnp.float32)),
        grid_spec=pltpu.PrefetchScalarGridSpec(
            num_scalar_prefetch=0,
            grid=(1,),
            in_specs=[pl.BlockSpec((rows, lane), lambda i: (0, 0))],
            out_specs=(pl.BlockSpec((rows, lane), lambda i: (0, 0)),
                       pl.BlockSpec((1, 1), lambda i: (0, 0)),
                       pl.BlockSpec((1, 1), lambda i: (0, 0)))),
        compiler_params=pltpu.CompilerParams(
            dimension_semantics=("arbitrary",),
            vmem_limit_bytes=_vmem_limit(4 * block_bytes)),
        cost_estimate=pl.CostEstimate(flops=8 * rows * lane, transcendentals=0,
                                      bytes_accessed=2 * rows * lane * 4),
    )(slab)
    return q, xmin[0, 0], xmax[0, 0]


# ---------------------------------------------------------------------------
# Streaming path, kernel A: global min/max with element-wise VPU accumulators.
# Grid = (chunk, tile); "parallel" chunk axis uses both TCs on v7x megacore.
# ---------------------------------------------------------------------------
def _minmax_kernel(x_ref, min_ref, max_ref, min_acc, max_acc):
    i = pl.program_id(1)
    x = x_ref[...]

    @pl.when(i == 0)
    def _():
        min_acc[...] = x
        max_acc[...] = x

    @pl.when(i > 0)
    def _():
        min_acc[...] = jnp.minimum(min_acc[...], x)   # pure VPU, no XLU in loop
        max_acc[...] = jnp.maximum(max_acc[...], x)

    @pl.when(i == pl.num_programs(1) - 1)
    def _():
        min_ref[...] = jnp.broadcast_to(jnp.min(min_acc[...]), min_ref.shape)
        max_ref[...] = jnp.broadcast_to(jnp.max(max_acc[...]), max_ref.shape)


def _global_minmax(slab, tile_rows):
    rows, lane = slab.shape
    n_tiles = rows // tile_rows
    nc = min(2, n_tiles)                     # 2-way chunk split -> megacore
    tpc = pl.cdiv(n_tiles, nc)

    def x_map(c, i):
        # Clamp: a duplicated tile read on the ragged last chunk is harmless
        # for min/max.
        return (jnp.minimum(c * tpc + i, n_tiles - 1), 0)

    block_bytes = tile_rows * lane * 4
    mins, maxs = pl.pallas_call(
        _minmax_kernel,
        out_shape=(jax.ShapeDtypeStruct((nc, 8, 128), jnp.float32),
                   jax.ShapeDtypeStruct((nc, 8, 128), jnp.float32)),
        grid_spec=pltpu.PrefetchScalarGridSpec(
            num_scalar_prefetch=0,
            grid=(nc, tpc),
            in_specs=[pl.BlockSpec((tile_rows, lane), x_map)],
            out_specs=(pl.BlockSpec((1, 8, 128), lambda c, i: (c, 0, 0)),
                       pl.BlockSpec((1, 8, 128), lambda c, i: (c, 0, 0))),
            scratch_shapes=[pltpu.VMEM((tile_rows, lane), jnp.float32),
                            pltpu.VMEM((tile_rows, lane), jnp.float32)]),
        compiler_params=pltpu.CompilerParams(
            dimension_semantics=("parallel", "arbitrary"),
            vmem_limit_bytes=_vmem_limit(4 * block_bytes)),
        cost_estimate=pl.CostEstimate(flops=2 * rows * lane, transcendentals=0,
                                      bytes_accessed=rows * lane * 4),
    )(slab)
    return jnp.min(mins), jnp.max(maxs)


# ---------------------------------------------------------------------------
# Streaming path, kernel B: fake-quantize with SMEM-scalar qparams.
# ---------------------------------------------------------------------------
def _quant_kernel(params_ref, x_ref, o_ref, *, qmin, qmax, dequantize):
    shift = params_ref[0]        # qmin*scale - zero_point   (SMEM scalar)
    inv_scale = params_ref[1]    # precomputed reciprocal    (SMEM scalar)
    scale = params_ref[2]        # SMEM scalar
    x = x_ref[...]
    q = jnp.round(jnp.clip((x + shift) * inv_scale, qmin, qmax))
    if dequantize:
        q = q * scale - shift
    o_ref[...] = q.astype(o_ref.dtype)


def _quantize_slab(slab, params, tm, qmin, qmax, dequantize):
    rows, lane = slab.shape
    n_tiles = rows // tm
    kernel = functools.partial(_quant_kernel, qmin=qmin, qmax=qmax,
                               dequantize=dequantize)
    block_bytes = tm * lane * 4
    return pl.pallas_call(
        kernel,
        out_shape=jax.ShapeDtypeStruct((rows, lane), jnp.float32),
        grid_spec=pltpu.PrefetchScalarGridSpec(
            num_scalar_prefetch=0,
            grid=(n_tiles,),
            in_specs=[pl.BlockSpec(memory_space=pltpu.MemorySpace.SMEM),
                      pl.BlockSpec((tm, lane), lambda i: (i, 0))],
            out_specs=pl.BlockSpec((tm, lane), lambda i: (i, 0))),
        compiler_params=pltpu.CompilerParams(
            dimension_semantics=("parallel",),
            vmem_limit_bytes=_vmem_limit(4 * block_bytes)),
        cost_estimate=pl.CostEstimate(flops=6 * rows * lane, transcendentals=0,
                                      bytes_accessed=2 * rows * lane * 4),
    )(params, slab)


# ---------------------------------------------------------------------------
# QuantMeasure.forward  (training / eval). Scalar buffer-update glue is JAX.
# ---------------------------------------------------------------------------
def quant_measure_forward(x, running_zero_point, running_range, num_bits,
                          momentum=0.9, training=True, dequantize=True,
                          signed=False, *, tile_rows=_TILE_ROWS,
                          fused_max_rows=_FUSED_MAX_ROWS):
    """Returns (quantized_x, new_running_zero_point, new_running_range)."""
    # TODO(synk): measure-mode (return input unchanged, momentum = n/(n+1)
    # counter) and stochastic-rounding noise are not implemented here.
    assert tile_rows % 8 == 0, "tile_rows must be a multiple of 8"
    qmin, qmax = _qbounds(num_bits, signed)
    slab, n = _as_slab(x, tile_rows, fused_max_rows)
    rows, _ = slab.shape
    fused = rows <= fused_max_rows

    if training:
        if fused:
            # Single pass over HBM: min/max + quantize in one kernel.
            q_slab, xmin, xmax = _fused_quantize(slab, qmin, qmax, dequantize)
        else:
            xmin, xmax = _global_minmax(slab, tile_rows)
        zero_point = xmin
        range_ = xmax - xmin
        new_zp = momentum * running_zero_point + (1.0 - momentum) * zero_point
        new_rng = momentum * running_range + (1.0 - momentum) * range_
        if not fused:
            params = _qparams_vector(zero_point, range_, qmin, qmax)
            q_slab = _quantize_slab(slab, params, tile_rows, qmin, qmax,
                                    dequantize)
    else:
        zero_point = running_zero_point.reshape(())
        range_ = running_range.reshape(())
        new_zp, new_rng = running_zero_point, running_range
        params = _qparams_vector(zero_point, range_, qmin, qmax)
        tm = rows if fused else tile_rows
        q_slab = _quantize_slab(slab, params, tm, qmin, qmax, dequantize)

    q = q_slab.reshape(-1)[:n].reshape(x.shape).astype(x.dtype)
    return q, new_zp, new_rng


# ---------------------------------------------------------------------------
# Pure-JAX reference mirroring the PyTorch math (divide replaced by the same
# multiply-by-reciprocal the kernels use; <= 1 ulp apart before rounding).
# ---------------------------------------------------------------------------
def _ref_forward(x, running_zero_point, running_range, num_bits,
                 momentum=0.9, training=True, dequantize=True, signed=False):
    qmin, qmax = _qbounds(num_bits, signed)
    x32 = x.astype(jnp.float32)
    if training:
        zp = jnp.min(x32)
        rng = jnp.max(x32) - jnp.min(x32)
        new_zp = momentum * running_zero_point + (1.0 - momentum) * zp
        new_rng = momentum * running_range + (1.0 - momentum) * rng
    else:
        zp = running_zero_point.reshape(())
        rng = running_range.reshape(())
        new_zp, new_rng = running_zero_point, running_range
    scale = jnp.maximum(rng / (qmax - qmin), jnp.float32(1e-8))
    inv_scale = 1.0 / scale
    shift = qmin * scale - zp
    q = jnp.round(jnp.clip((x32 + shift) * inv_scale, qmin, qmax))
    if dequantize:
        q = q * scale - shift
    return q.astype(x.dtype), new_zp, new_rng


if __name__ == "__main__":
    key = jax.random.PRNGKey(0)
    k1, k2 = jax.random.split(key)
    num_bits = 8
    momentum = 0.9
    rzp = jnp.zeros((1,), jnp.float32)    # buffers initialise to zero
    rrng = jnp.zeros((1,), jnp.float32)

    def check(name, got, want, atol=1e-5):
        assert got.shape == want.shape, (name, got.shape, want.shape)
        assert jnp.allclose(got, want, atol=atol, rtol=1e-5), (
            name, float(jnp.max(jnp.abs(got - want))))

    # 1) Canonical 2-D activations (tokens, hidden), training mode
    #    -> fused single-pass kernel.
    x1 = jax.random.normal(k1, (16, 128), jnp.float32)
    q1, zp1, rng1 = quant_measure_forward(x1, rzp, rrng, num_bits,
                                          momentum=momentum, training=True)
    jax.block_until_ready((q1, zp1, rng1))
    q1r, zp1r, rng1r = _ref_forward(x1, rzp, rrng, num_bits, momentum, True)
    check("q (fused, training)", q1, q1r)
    check("running_zero_point", zp1, zp1r, atol=1e-6)
    check("running_range", rng1, rng1r, atol=1e-6)

    # 2) Eval mode with the updated running buffers -> SMEM-param quant kernel.
    q2, zp2, rng2 = quant_measure_forward(x1, zp1, rng1, num_bits,
                                          momentum=momentum, training=False)
    q2r, _, _ = _ref_forward(x1, zp1, rng1, num_bits, momentum, False)
    check("q (eval)", q2, q2r)
    check("zero_point unchanged", zp2, zp1)
    check("range unchanged", rng2, rng1)

    # 3) Odd shape + tiny tiles: exercises edge padding, the chunked
    #    ("parallel","arbitrary") min/max reduction and the streaming quantize
    #    kernel (the large-input code path) at a small size.
    x3 = jax.random.normal(k2, (64, 130), jnp.float32) * 3.0 + 1.0
    q3, zp3, rng3 = quant_measure_forward(x3, rzp, rrng, num_bits,
                                          momentum=momentum, training=True,
                                          tile_rows=8, fused_max_rows=1)
    q3r, zp3r, rng3r = _ref_forward(x3, rzp, rrng, num_bits, momentum, True)
    check("q (streaming, training)", q3, q3r)
    check("running_zero_point (streaming)", zp3, zp3r, atol=1e-6)
    check("running_range (streaming)", rng3, rng3r, atol=1e-6)

    # 4) Signed quantization path.
    q4, _, _ = quant_measure_forward(x1, rzp, rrng, num_bits,
                                     momentum=momentum, training=True,
                                     signed=True)
    q4r, _, _ = _ref_forward(x1, rzp, rrng, num_bits, momentum, True,
                             signed=True)
    check("q (signed)", q4, q4r)

    jax.block_until_ready((q2, q3, q4))
    print("KERNEL_OK")
</pallas_src>

<mosaic_0001>
module attributes {stable_mosaic.version = 11 : i64} {
  func.func @_fused_kernel(%arg0: i32, %arg1: memref<4x512xf32, #tpu.memory_space<vmem>>, %arg2: memref<4x512xf32, #tpu.memory_space<vmem>>, %arg3: memref<1x1xf32, #tpu.memory_space<vmem>>, %arg4: memref<1x1xf32, #tpu.memory_space<vmem>>) attributes {dimension_semantics = [#tpu.dimension_semantics<arbitrary>], iteration_bounds = array<i64: 1>, scalar_prefetch = 0 : i64, scratch_operands = 0 : i64, tpu.core_type = #tpu.core_type<tc>, window_params = [{pipeline_mode = #tpu.pipeline_mode<synchronous>, transform_indices = @transform_0, window_bounds = array<i64: 4, 512>}, {pipeline_mode = #tpu.pipeline_mode<synchronous>, transform_indices = @transform_1, window_bounds = array<i64: 4, 512>}, {pipeline_mode = #tpu.pipeline_mode<synchronous>, transform_indices = @transform_2, window_bounds = array<i64: 1, 1>}, {pipeline_mode = #tpu.pipeline_mode<synchronous>, transform_indices = @transform_3, window_bounds = array<i64: 1, 1>}]} {
    %c0 = arith.constant 0 : index
    %c0_0 = arith.constant 0 : index
    %0 = vector.load %arg1[%c0, %c0_0] : memref<4x512xf32, #tpu.memory_space<vmem>>, vector<4x512xf32>
    %1 = vector.shape_cast %0 : vector<4x512xf32> to vector<1x4x512xf32>
    %cst = arith.constant dense<0x7F800000> : vector<1xf32>
    %2 = vector.multi_reduction <minimumf>, %1, %cst [1, 2] : vector<1x4x512xf32> to vector<1xf32>
    %3 = vector.shape_cast %2 : vector<1xf32> to vector<1x1x1xf32>
    %4 = vector.extract %3[0, 0, 0] : f32 from vector<1x1x1xf32>
    %5 = vector.shape_cast %0 : vector<4x512xf32> to vector<1x4x512xf32>
    %cst_1 = arith.constant dense<0xFF800000> : vector<1xf32>
    %6 = vector.multi_reduction <maximumf>, %5, %cst_1 [1, 2] : vector<1x4x512xf32> to vector<1xf32>
    %7 = vector.shape_cast %6 : vector<1xf32> to vector<1x1x1xf32>
    %8 = vector.extract %7[0, 0, 0] : f32 from vector<1x1x1xf32>
    %9 = arith.subf %8, %4 : f32
    %cst_2 = arith.constant 2.550000e+02 : f32
    %10 = arith.divf %9, %cst_2 : f32
    %cst_3 = arith.constant 9.99999993E-9 : f32
    %11 = arith.maximumf %10, %cst_3 : f32
    %cst_4 = arith.constant 1.000000e+00 : f32
    %12 = arith.divf %cst_4, %11 : f32
    %cst_5 = arith.constant 0.000000e+00 : f32
    %13 = arith.mulf %cst_5, %11 : f32
    %14 = arith.subf %13, %4 : f32
    %15 = vector.broadcast %14 : f32 to vector<4x512xf32>
    %16 = arith.addf %0, %15 : vector<4x512xf32>
    %17 = vector.broadcast %12 : f32 to vector<4x512xf32>
    %18 = arith.mulf %16, %17 : vector<4x512xf32>
    %cst_6 = arith.constant 0.000000e+00 : f32
    %cst_7 = arith.constant 2.550000e+02 : f32
    %19 = vector.broadcast %cst_6 : f32 to vector<4x512xf32>
    %20 = arith.maximumf %19, %18 : vector<4x512xf32>
    %21 = vector.broadcast %cst_7 : f32 to vector<4x512xf32>
    %22 = arith.minimumf %21, %20 : vector<4x512xf32>
    %23 = math.roundeven %22 : vector<4x512xf32>
    %24 = vector.broadcast %11 : f32 to vector<4x512xf32>
    %25 = arith.mulf %23, %24 : vector<4x512xf32>
    %26 = vector.broadcast %14 : f32 to vector<4x512xf32>
    %27 = arith.subf %25, %26 : vector<4x512xf32>
    %c0_8 = arith.constant 0 : index
    %c0_9 = arith.constant 0 : index
    %28 = vector.load %arg2[%c0_8, %c0_9] : memref<4x512xf32, #tpu.memory_space<vmem>>, vector<4x512xf32>
    tpu.vector_store %arg2[%c0_8, %c0_9], %27 {strides = array<i32>} : memref<4x512xf32, #tpu.memory_space<vmem>>, vector<4x512xf32>,
    %29 = vector.broadcast %4 : f32 to vector<1x1xf32>
    %c0_10 = arith.constant 0 : index
    %c0_11 = arith.constant 0 : index
    %30 = vector.load %arg3[%c0_10, %c0_11] : memref<1x1xf32, #tpu.memory_space<vmem>>, vector<1x1xf32>
    tpu.vector_store %arg3[%c0_10, %c0_11], %29 {strides = array<i32>} : memref<1x1xf32, #tpu.memory_space<vmem>>, vector<1x1xf32>,
    %31 = vector.broadcast %8 : f32 to vector<1x1xf32>
    %c0_12 = arith.constant 0 : index
    %c0_13 = arith.constant 0 : index
    %32 = vector.load %arg4[%c0_12, %c0_13] : memref<1x1xf32, #tpu.memory_space<vmem>>, vector<1x1xf32>
    tpu.vector_store %arg4[%c0_12, %c0_13], %31 {strides = array<i32>} : memref<1x1xf32, #tpu.memory_space<vmem>>, vector<1x1xf32>,
    return
  }
  func.func @transform_0(%arg0: i32) -> (i32, i32) {
    %c0_i32 = arith.constant 0 : i32
    %c0_i32_0 = arith.constant 0 : i32
    %c0_i32_1 = arith.constant 0 : i32
    return %c0_i32, %c0_i32_0 : i32, i32
  }
  func.func @transform_1(%arg0: i32) -> (i32, i32) {
    %c0_i32 = arith.constant 0 : i32
    %c0_i32_0 = arith.constant 0 : i32
    %c0_i32_1 = arith.constant 0 : i32
    return %c0_i32, %c0_i32_0 : i32, i32
  }
  func.func @transform_2(%arg0: i32) -> (i32, i32) {
    %c0_i32 = arith.constant 0 : i32
    %c0_i32_0 = arith.constant 0 : i32
    %c0_i32_1 = arith.constant 0 : i32
    return %c0_i32, %c0_i32_0 : i32, i32
  }
  func.func @transform_3(%arg0: i32) -> (i32, i32) {
    %c0_i32 = arith.constant 0 : i32
    %c0_i32_0 = arith.constant 0 : i32
    %c0_i32_1 = arith.constant 0 : i32
    return %c0_i32, %c0_i32_0 : i32, i32
  }
}

</mosaic_0001>

<bundles_post_ra>
// kernel: tpu_custom_call.1
= control target key start
LH: loop header
LB: loop body
LE: loop exit
PB: predicated region body
PF: predicated region fallthrough
CT: control target
= control target key end

     0   :  { %9 = vsyncpa [#allocation3], 0  ;;  %s386_s0 = inlined_call_operand.hbm [shape: f32[4,512], index: 0, kind: input, shape index: {}]   ;;  %s387_s1 = inlined_call_operand.hbm [shape: f32[4,512], index: 1, kind: output, shape index: {0}]   ;;  %s388_s2 = inlined_call_operand.hbm [shape: f32[1,1], index: 2, kind: output, shape index: {1}]   ;;  %s389_s3 = inlined_call_operand.hbm [shape: f32[1,1], index: 3, kind: output, shape index: {2}]  }
   0x1   :  { %10 = vsyncpa [#allocation4], 0 }
   0x2   :  { %11 = vsyncpa [#allocation7], 0  ;;  %s17_s14 = sshll.u32 %s386_s0, 4  ;;  %s323_s15 = smov [#allocation2]   ;;  %s18_s14 = int_to_ptr.hbm [resolvable:$true] %s17_s14 }
   0x3   :  { %s19_s16 = sshll.u32 %s323_s15, 4  ;;  %s20_s16 = int_to_ptr.vmem [resolvable:$true] %s19_s16 }
   0x4   :  { %22 = dma.hbm_to_vmem [thread:$0]  %s18_s14, 256, %s20_s16, [#allocation3]  }
   0x5   :  { %317 = dma.done.wait [#allocation3], 256  }
   0x6   :  { %318 = vsyncadd [#allocation3], 4294967040  ;;  %v352_v0 = vld [vmem:[#allocation2] sm:$0xff]  ;;  %v354_v1 = vld [vmem:[#allocation2 + $0x8] sm:$0xff]  ;;  %vm42_vm0 = vcmask 1043456   ;;  %v324_v24 = vmov 255.0  }
   0x7   :  { %31 = vst [vmem:[#allocation1] ss:$2 sm:$0xff] %v352_v0  ;;  %217 = vrcp.f32 %v324_v24  ;;  %s157_s18 = sshll.u32 %s388_s2, 4  ;;  %s325_s19 = smov [#allocation6]   ;;  %vm135_vm2 = vcmask 0   ;;  %s158_s18 = int_to_ptr.hbm [resolvable:$true] %s157_s18 }
   0x8   :  { %33 = vst [vmem:[#allocation1 + $0x10] ss:$2 sm:$0xff] %v354_v1  ;;  %s155_s20 = sshll.u32 %s325_s19, 4  ;;  %s326_s22 = smov [#allocation8]   ;;  %s156_s20 = int_to_ptr.vmem [resolvable:$true] %s155_s20 }
   0x9   :  { %s166_s23 = sshll.u32 %s326_s22, 4  ;;  %s168_s26 = sshll.u32 %s389_s3, 4  ;;  %s167_s23 = int_to_ptr.vmem [resolvable:$true] %s166_s23  ;;  %s169_s26 = int_to_ptr.hbm [resolvable:$true] %s168_s26 }
   0xa   :  { %s327_s30 = smov 1e-08   ;;  %s328_s7 = smov [#allocation5]  }
   0xb   :  { %s144_s8 = sshll.u32 %s328_s7, 4  ;;  %s146_s11 = sshll.u32 %s387_s1, 4  ;;  %s145_s8 = int_to_ptr.vmem [resolvable:$true] %s144_s8  ;;  %s147_s11 = int_to_ptr.hbm [resolvable:$true] %s146_s11 }
   0xd   :  { %v218_v26 = vpop.eup %217 }
   0xe   :  { %v34_v2 = vld.sshfl [vmem:[#allocation1] sm:$0xff pattern:$0x75316420]  ;;  %v35_v3 = vld.sshfl [vmem:[#allocation1 + $0x8] sm:$0xff pattern:$0x75316420]  ;;  %vm92_vm1 = vweird.f32 %v218_v26 }
   0xf   :  { %v36_v4 = vld.sshfl [vmem:[#allocation1 + $0x10] sm:$0xff pattern:$0x75316420]  ;;  %v37_v5 = vld.sshfl [vmem:[#allocation1 + $0x18] sm:$0xff pattern:$0x75316420] }
  0x10   :  { %v43_v6 = vsel %vm42_vm0, %v34_v2, inf  ;;  %v44_v7 = vsel %vm42_vm0, %v35_v3, inf  ;;  %v45_v8 = vsel %vm42_vm0, %v36_v4, inf  ;;  %v46_v9 = vsel %vm42_vm0, %v37_v5, inf  ;;  %59 = vst [vmem:[#allocation1] ss:$2 sm:$0xff] %v352_v0 }
  0x11   :  { %v47_v10 = vmin.f32 %v43_v6, %v44_v7  ;;  %v48_v11 = vmin.f32 %v45_v8, %v46_v9  ;;  %61 = vst [vmem:[#allocation1 + $0x10] ss:$2 sm:$0xff] %v354_v1  ;;  %v88_v29 = vmul.f32 255.0, %v218_v26 }
  0x13   :  { %v49_v12 = vmin.f32 %v47_v10, %v48_v11  ;;  %v89_v32 = vsub.f32 1.0, %v88_v29 }
  0x15   :  { %50 = vmin.xlane.f32.xlu0 %v49_v12  ;;  %v90_v38 = vmul.f32 %v218_v26, %v89_v32 }
  0x17   :  { %v62_v13 = vld.sshfl [vmem:[#allocation1] sm:$0xff pattern:$0x75316420]  ;;  %v63_v14 = vld.sshfl [vmem:[#allocation1 + $0x8] sm:$0xff pattern:$0x75316420]  ;;  %v91_v41 = vadd.f32 %v218_v26, %v90_v38 }
  0x18   :  { %v64_v15 = vld.sshfl [vmem:[#allocation1 + $0x10] sm:$0xff pattern:$0x75316420]  ;;  %v65_v16 = vld.sshfl [vmem:[#allocation1 + $0x18] sm:$0xff pattern:$0x75316420] }
  0x19   :  { %v70_v17 = vsel %vm42_vm0, %v62_v13, -inf  ;;  %v71_v18 = vsel %vm42_vm0, %v63_v14, -inf  ;;  %v72_v19 = vsel %vm42_vm0, %v64_v15, -inf  ;;  %v73_v20 = vsel %vm42_vm0, %v65_v16, -inf }
  0x1a   :  { %v74_v21 = vmax.f32 %v70_v17, %v71_v18  ;;  %v75_v22 = vmax.f32 %v72_v19, %v73_v20  ;;  %v93_v44 = vsel %vm92_vm1, %v218_v26, %v91_v41 }
  0x1c   :  { %v76_v23 = vmax.f32 %v74_v21, %v75_v22 }
  0x1e   :  { %77 = vmax.xlane.f32.xlu0 %v76_v23 }
  0x88   :  { %v51_v25 = vpop.xlane.xlu0 %50 }
  0x89   :  { %v52_v27 = vrot.slane %v51_v25, 4 }
  0x8b   :  { %v53_v28 = vmin.f32 %v51_v25, %v52_v27 }
  0x8d   :  { %v54_v30 = vrot.slane %v53_v28, 2 }
  0x8f   :  { %v55_v31 = vmin.f32 %v53_v28, %v54_v30 }
  0x91   :  { %v78_v33 = vpop.xlane.xlu0 %77  ;;  %v56_v34 = vrot.slane %v55_v31, 1 }
  0x92   :  { %v79_v35 = vrot.slane %v78_v33, 4 }
  0x93   :  { %v57_v36 = vmin.f32 %v55_v31, %v56_v34 }
  0x94   :  { %v80_v37 = vmax.f32 %v78_v33, %v79_v35 }
  0x95   :  { %187 = vpush %v57_v36 }
  0x96   :  { %v81_v39 = vrot.slane %v80_v37, 2 }
  0x98   :  { %v82_v40 = vmax.f32 %v80_v37, %v81_v39 }
  0x9a   :  { %v83_v42 = vrot.slane %v82_v40, 1 }
  0x9c   :  { %v84_v43 = vmax.f32 %v82_v40, %v83_v42 }
  0x9e   :  { %189 = vpush %v84_v43 }
  0x9f   :  { %191 = vpush %v93_v44 }
  0xc6   :  { %s371_s21 = spop %187 }
  0xc7   :  { %v134_v45 = vstv %s371_s21 }
  0xc8   :  { %136 = vst.msk [vmem:[#allocation6] sm:$0x1] %vm135_vm2, %v134_v45 }
  0xc9   :  { %160 = dma.vmem_to_hbm [thread:$0]  %s156_s20, 16, %s158_s18, [#allocation7]  }
  0xcf   :  { %s190_s2 = spop %189 }
  0xd0   :  { %s86_s27 = ssub.f32 %s190_s2, %s371_s21  ;;  %v137_v46 = vstv %s190_s2  ;;  %s192_s28 = spop %191 }
  0xd1   :  { %138 = vst.msk [vmem:[#allocation8] sm:$0x1] %vm135_vm2, %v137_v46 }
  0xd2   :  { %s95_s29 = smul.f32 %s192_s28, %s86_s27 }
  0xd3   :  { %171 = dma.vmem_to_hbm [thread:$0]  %s167_s23, 16, %s169_s26, [#allocation7]  }
  0xd4   :  { %s96_s4 = smax.f32 %s327_s30, %s95_s29 }
  0xd5   :  { %v97_v47 = vstv %s96_s4  ;;  %s113_s3 = smul.f32 0.0, %s96_s4 }
  0xd6   :  { %219 = vrcp.f32 %v97_v47  ;;  %v109_v51 = vand.u32 2147483648, %v97_v47  ;;  %v107_v53 = vand.u32 2147483647, %v97_v47  ;;  %vm103_vm4 = vweird.f32 %v97_v47 }
  0xd7   :  { %s114_s5 = ssub.f32 %s113_s3, %s371_s21 }
  0xd8   :  { %v110_v55 = vor.u32 1.1754944e-38, %v109_v51  ;;  %vm108_vm6 = vcmp.eq.f32.partialorder %v107_v53, 8.507059e+37 }
  0xd9   :  { %v115_v58 = vstv %s114_s5 }
  0xda   :  { %v116_v59 = vadd.f32 %v115_v58, %v352_v0  ;;  %v117_v60 = vadd.f32 %v115_v58, %v354_v1 }
  0xdc   :  { %v220_v48 = vpop.eup %219 }
  0xdd   :  { %v99_v49 = vmul.f32 %v220_v48, %v97_v47  ;;  %vm104_vm3 = vweird.f32 %v220_v48 }
  0xde   :  { %vm105_vm5 = vmor %vm103_vm4, %vm104_vm3 }
  0xdf   :  { %v100_v50 = vsub.f32 1.0, %v99_v49 }
  0xe1   :  { %v101_v52 = vmul.f32 %v220_v48, %v100_v50 }
  0xe3   :  { %v102_v54 = vadd.f32 %v220_v48, %v101_v52 }
  0xe5   :  { %v106_v56 = vsel %vm105_vm5, %v220_v48, %v102_v54 }
  0xe6   :  { %v111_v57 = vsel %vm108_vm6, %v110_v55, %v106_v56 }
  0xe7   :  { %193 = vpush %v111_v57 }
 0x118   :  { %s194_s6 = spop %193 }
 0x119   :  { %v118_v61 = vstv %s194_s6 }
 0x11a   :  { %v119_v62 = vmul.f32 %v118_v61, %v116_v59  ;;  %v120_v63 = vmul.f32 %v118_v61, %v117_v60 }
 0x11c   :  { %v121_v2 = vmax.f32 %v119_v62, 0.0  ;;  %v122_v3 = vmax.f32 %v120_v63, 0.0 }
 0x11e   :  { %v123_v4 = vmin.f32 %v121_v2, 255.0  ;;  %v124_v5 = vmin.f32 %v122_v3, 255.0 }
 0x120   :  { %v197_v6 = vcvt.f32.s32 %v123_v4  ;;  %v205_v7 = vcvt.f32.s32 %v124_v5  ;;  %v195_v9 = vand.u32 2147483647, %v123_v4  ;;  %v200_v12 = vand.u32 2147483648, %v123_v4 }
 0x121   :  { %v203_v13 = vand.u32 2147483647, %v124_v5  ;;  %v208_v15 = vand.u32 2147483648, %v124_v5 }
 0x122   :  { %v198_v8 = vcvt.s32.f32 %v197_v6  ;;  %v206_v10 = vcvt.s32.f32 %v205_v7  ;;  %vm196_vm7 = vcmp.lt.f32.partialorder %v195_v9, 8388608.0 }
 0x123   :  { %vm204_vm8 = vcmp.lt.f32.partialorder %v203_v13, 8388608.0 }
 0x124   :  { %v199_v11 = vand.u32 2147483647, %v198_v8  ;;  %v207_v14 = vand.u32 2147483647, %v206_v10 }
 0x126   :  { %v201_v0 = vor.u32 %v200_v12, %v199_v11  ;;  %v209_v1 = vor.u32 %v208_v15, %v207_v14 }
 0x128   :  { %v202_v16 = vsel %vm196_vm7, %v201_v0, %v123_v4  ;;  %v210_v17 = vsel %vm204_vm8, %v209_v1, %v124_v5 }
 0x129   :  { %v128_v18 = vmul.f32 %v202_v16, %v97_v47  ;;  %v129_v19 = vmul.f32 %v210_v17, %v97_v47 }
 0x12b   :  { %v130_v20 = vsub.f32 %v128_v18, %v115_v58  ;;  %v131_v21 = vsub.f32 %v129_v19, %v115_v58 }
 0x12d   :  { %132 = vst [vmem:[#allocation5] sm:$0xff] %v130_v20 }
 0x12e   :  { %133 = vst [vmem:[#allocation5 + $0x8] sm:$0xff] %v131_v21 }
 0x12f   :  { %149 = dma.vmem_to_hbm [thread:$0]  %s145_s8, 256, %s147_s11, [#allocation4]  }
 0x130   :  { %319 = dma.done.wait [#allocation4], 256  }
 0x131   :  { %320 = vsyncadd [#allocation4], 4294967040 }
 0x132   :  { %321 = dma.done.wait [#allocation7], 32  }
 0x133   :  { %322 = vsyncadd [#allocation7], 4294967264 }
 0x134   :  { %184 = vsyncpa [#allocation3], 1 }
 0x135   :  { %185 = vsyncpa [#allocation4], 1 }
 0x136   :  { %186 = vsyncpa [#allocation7], 1 }

</bundles_post_ra>
